<compile_context>
chip_gen: v5e
topology: v5e:2x2
jax: 0.10.0
libtpu: 0.0.40
codegen_flags: <defaults>
</compile_context>

<pallas_src>
import math

import jax
import jax.numpy as jnp
from jax import lax
from jax.experimental import pallas as pl
from jax.experimental.pallas import tpu as pltpu


def _round_up(x, m):
    return ((x + m - 1) // m) * m


def _cdiv(a, b):
    return -(-a // b)


def _make_kernel(tr, tail_rows, use_mask):
    """Streaming sum of (y_pred - y_true)^2 [* mask], tr rows per grid step.

    tr:        rows per block (multiple of 8, static)
    tail_rows: R % tr; 0 means every block is full (no in-kernel row masking)
    use_mask:  whether a (tr, 1) f32 mask block is streamed and multiplied in
    """

    def kernel(*refs):
        if use_mask:
            yp_ref, yt_ref, m_ref, out_ref, acc_ref = refs
        else:
            yp_ref, yt_ref, out_ref, acc_ref = refs

        i = pl.program_id(0)

        @pl.when(i == 0)
        def _():
            acc_ref[...] = jnp.zeros_like(acc_ref)

        yp = yp_ref[...].astype(jnp.float32)      # native dtype streamed, cast on-chip
        yt = yt_ref[...].astype(jnp.float32)
        diff = yp - yt
        sq = diff * diff                          # (tr, D)
        if use_mask:
            sq = sq * m_ref[...]                  # (tr, 1) broadcasts over lanes

        if tail_rows:
            # Ragged tail handled in-kernel: only the last block can be partial.
            # Use a select (not a multiply) so HBM garbage (possibly inf/nan) in the
            # out-of-range rows never reaches the accumulator.
            row_ids = lax.broadcasted_iota(jnp.int32, (tr, 1), 0)
            limit = jnp.where(i == pl.num_programs(0) - 1, tail_rows, tr)
            sq = jnp.where(row_ids < limit, sq, 0.0)

        # Tree-reducible accumulation into the (8, D) f32 scratch; no per-step
        # cross-lane reduce and no long serial vreg dependence chain.
        acc_ref[...] += sq.reshape(tr // 8, 8, -1).sum(axis=0)

        @pl.when(i == pl.num_programs(0) - 1)
        def _():
            total = jnp.sum(acc_ref[...])
            out_ref[...] = jnp.zeros_like(out_ref) + total

    return kernel


def custom_loss(y_pred, y_true, mask=None, *, row_tile=None,
                target_block_bytes=2 << 20, vmem_limit_bytes=None):
    """Pallas implementation of CustomLoss.forward.

    y_pred, y_true: (..., D) arrays (any float dtype; streamed in native dtype)
    mask:           optional array of shape y_pred.shape[:-1] (float/bool/int)
    row_tile:       rows of the flattened (R, D) matrix per grid step (None = auto,
                    ~target_block_bytes per input block, clamped to [8, 2048] rows)
    """
    *lead, D = y_pred.shape
    R = 1
    for d in lead:
        R *= d
    total_elems = R * D
    itemsize = jnp.dtype(y_pred.dtype).itemsize

    yp = y_pred.reshape(R, D)                     # no dtype cast in the wrapper
    yt = y_true.reshape(R, D)

    use_mask = mask is not None
    if use_mask:
        m = mask.reshape(R, 1).astype(jnp.float32)
        denom = jnp.sum(m) * jnp.float32(D)       # mask.unsqueeze(-1).expand_as(y_pred).sum()
    else:
        m = None
        denom = jnp.float32(total_elems)          # mse.mean() == sum(sq) / (R*D)
        # Lane-dense regrouping for narrow D (sum is invariant under any reshape):
        # view (R, D) as (R/g, g*D) so the last dim is a multiple of 128.
        if D < 128:
            g = 128 // math.gcd(D, 128)
            if g > 1 and R % g == 0:
                R, D = R // g, D * g
                yp = yp.reshape(R, D)
                yt = yt.reshape(R, D)

    # --- Tile sizing: clamp by block BYTES, not rows. ---
    bytes_per_row = max(1, D * itemsize)
    if row_tile is None:
        row_tile = max(8, target_block_bytes // bytes_per_row)
    tr = max(8, min(int(row_tile), 2048))
    tr = min(tr, _round_up(R, 8))                 # never bigger than the whole input
    tr = _round_up(tr, 8)

    n_steps = _cdiv(R, tr)
    tail_rows = R % tr                            # 0 -> every block is full

    # --- VMEM budget -> explicit vmem_limit_bytes (safe on v5e/v6e/v7x). ---
    block_bytes = tr * D * itemsize
    needed = 2 * 2 * block_bytes                  # yp/yt, double-buffered
    if use_mask:
        needed += 2 * tr * 128 * 4                # (tr,1) mask pads to 128 lanes, x2 buffers
    needed += 8 * max(D, 128) * 4                 # accumulator scratch (lane padded)
    needed += 2 * 8 * 128 * 4                     # output block
    if vmem_limit_bytes is None:
        vmem_limit_bytes = int(min(max(needed + needed // 2 + (2 << 20), 16 << 20),
                                   48 << 20))

    kernel = _make_kernel(tr, tail_rows, use_mask)

    in_specs = [pl.BlockSpec((tr, D), lambda i: (i, 0)),
                pl.BlockSpec((tr, D), lambda i: (i, 0))]
    args = [yp, yt]
    if use_mask:
        in_specs.append(pl.BlockSpec((tr, 1), lambda i: (i, 0)))
        args.append(m)

    cost = pl.CostEstimate(
        flops=3 * R * D,
        transcendentals=0,
        bytes_accessed=2 * R * D * itemsize + (R * 4 if use_mask else 0) + 8 * 128 * 4,
    )

    out = pl.pallas_call(
        kernel,
        out_shape=jax.ShapeDtypeStruct((8, 128), jnp.float32),
        grid_spec=pltpu.PrefetchScalarGridSpec(
            num_scalar_prefetch=0,
            grid=(n_steps,),
            in_specs=in_specs,
            out_specs=pl.BlockSpec((8, 128), lambda i: (0, 0)),
            scratch_shapes=[pltpu.VMEM((8, D), jnp.float32)],
        ),
        compiler_params=pltpu.CompilerParams(
            dimension_semantics=("arbitrary",),   # output block revisited -> reduction axis
            vmem_limit_bytes=vmem_limit_bytes,
        ),
        cost_estimate=cost,
    )(*args)

    # Note: denom == 0 (all-zero mask) yields inf/nan, matching the PyTorch reference.
    return (out[0, 0] / denom).astype(jnp.float32)


if __name__ == "__main__":
    key = jax.random.PRNGKey(0)
    k1, k2, k3 = jax.random.split(key, 3)

    B, S, D = 2, 8, 32
    y_pred = jax.random.normal(k1, (B, S, D), dtype=jnp.float32)
    y_true = jax.random.normal(k2, (B, S, D), dtype=jnp.float32)
    mask = (jax.random.uniform(k3, (B, S)) > 0.3).astype(jnp.float32)
    mask = mask.at[0, 0].set(1.0)                 # guarantee non-zero denominator

    # Masked case.
    loss_masked = jax.block_until_ready(custom_loss(y_pred, y_true, mask))
    ref_masked = (jnp.sum((y_pred - y_true) ** 2 * mask[..., None])
                  / (jnp.sum(mask) * D))
    assert jnp.allclose(loss_masked, ref_masked, rtol=1e-5, atol=1e-6), (
        loss_masked, ref_masked)

    # Unmasked case (plain mean; exercises the mask-free kernel + lane-dense regroup
    # + in-kernel ragged-tail masking).
    loss_plain = jax.block_until_ready(custom_loss(y_pred, y_true, None))
    ref_plain = jnp.mean((y_pred - y_true) ** 2)
    assert jnp.allclose(loss_plain, ref_plain, rtol=1e-5, atol=1e-6), (
        loss_plain, ref_plain)

    # Ragged row count + native bf16 streaming (masked path, partial last block).
    Br, Sr = 3, 5
    yp_b = jax.random.normal(k1, (Br, Sr, D), dtype=jnp.float32).astype(jnp.bfloat16)
    yt_b = jax.random.normal(k2, (Br, Sr, D), dtype=jnp.float32).astype(jnp.bfloat16)
    mk_b = (jax.random.uniform(k3, (Br, Sr)) > 0.4).astype(jnp.float32)
    mk_b = mk_b.at[0, 0].set(1.0)
    loss_b = jax.block_until_ready(custom_loss(yp_b, yt_b, mk_b))
    d_b = yp_b.astype(jnp.float32) - yt_b.astype(jnp.float32)
    ref_b = jnp.sum(d_b * d_b * mk_b[..., None]) / (jnp.sum(mk_b) * D)
    assert jnp.allclose(loss_b, ref_b, rtol=1e-5, atol=1e-6), (loss_b, ref_b)

    # Larger multi-step case (several grid steps + non-divisible tail), unmasked.
    Bl, Sl, Dl = 7, 123, 256
    yp_l = jax.random.normal(k1, (Bl, Sl, Dl), dtype=jnp.float32)
    yt_l = jax.random.normal(k2, (Bl, Sl, Dl), dtype=jnp.float32)
    loss_l = jax.block_until_ready(custom_loss(yp_l, yt_l, None, row_tile=128))
    ref_l = jnp.mean((yp_l - yt_l) ** 2)
    assert jnp.allclose(loss_l, ref_l, rtol=1e-5, atol=1e-6), (loss_l, ref_l)

    print("KERNEL_OK")
</pallas_src>

<mosaic_0001>
module attributes {stable_mosaic.version = 11 : i64} {
  func.func @kernel(%arg0: i32, %arg1: memref<16x32xf32, #tpu.memory_space<vmem>>, %arg2: memref<16x32xf32, #tpu.memory_space<vmem>>, %arg3: memref<16x1xf32, #tpu.memory_space<vmem>>, %arg4: memref<8x128xf32, #tpu.memory_space<vmem>>, %arg5: memref<8x32xf32, #tpu.memory_space<vmem>>) attributes {dimension_semantics = [#tpu.dimension_semantics<arbitrary>], iteration_bounds = array<i64: 1>, scalar_prefetch = 0 : i64, scratch_operands = 1 : i64, tpu.core_type = #tpu.core_type<tc>, window_params = [{transform_indices = @transform_0, window_bounds = array<i64: 16, 32>}, {transform_indices = @transform_1, window_bounds = array<i64: 16, 32>}, {transform_indices = @transform_2, window_bounds = array<i64: 16, 1>}, {pipeline_mode = #tpu.pipeline_mode<synchronous>, transform_indices = @transform_3, window_bounds = array<i64: 8, 128>}]} {
    %c0_i32 = arith.constant 0 : i32
    %0 = arith.cmpi eq, %arg0, %c0_i32 : i32
    %1 = arith.extui %0 : i1 to i32
    %c0_i32_0 = arith.constant 0 : i32
    %2 = arith.cmpi ne, %1, %c0_i32_0 : i32
    scf.if %2 {
      %cst_12 = arith.constant 0.000000e+00 : f32
      %18 = vector.broadcast %cst_12 : f32 to vector<8x32xf32>
      %c0_13 = arith.constant 0 : index
      %c0_14 = arith.constant 0 : index
      %19 = vector.load %arg5[%c0_13, %c0_14] : memref<8x32xf32, #tpu.memory_space<vmem>>, vector<8x32xf32>
      tpu.vector_store %arg5[%c0_13, %c0_14], %18 {strides = array<i32>} : memref<8x32xf32, #tpu.memory_space<vmem>>, vector<8x32xf32>,
    } else {
    }
    %c0 = arith.constant 0 : index
    %c0_1 = arith.constant 0 : index
    %3 = vector.load %arg1[%c0, %c0_1] : memref<16x32xf32, #tpu.memory_space<vmem>>, vector<16x32xf32>
    %c0_2 = arith.constant 0 : index
    %c0_3 = arith.constant 0 : index
    %4 = vector.load %arg2[%c0_2, %c0_3] : memref<16x32xf32, #tpu.memory_space<vmem>>, vector<16x32xf32>
    %5 = arith.subf %3, %4 : vector<16x32xf32>
    %6 = arith.mulf %5, %5 : vector<16x32xf32>
    %c0_4 = arith.constant 0 : index
    %c0_5 = arith.constant 0 : index
    %7 = vector.load %arg3[%c0_4, %c0_5] : memref<16x1xf32, #tpu.memory_space<vmem>>, vector<16x1xf32>
    %8 = vector.broadcast %7 : vector<16x1xf32> to vector<16x32xf32>
    %9 = arith.mulf %6, %8 : vector<16x32xf32>
    %c0_6 = arith.constant 0 : index
    %c0_7 = arith.constant 0 : index
    %10 = vector.load %arg5[%c0_6, %c0_7] : memref<8x32xf32, #tpu.memory_space<vmem>>, vector<8x32xf32>
    %11 = vector.shape_cast %9 : vector<16x32xf32> to vector<2x8x32xf32>
    %cst = arith.constant dense<0.000000e+00> : vector<8x32xf32>
    %12 = vector.multi_reduction <add>, %11, %cst [0] : vector<2x8x32xf32> to vector<8x32xf32>
    %13 = arith.addf %10, %12 : vector<8x32xf32>
    %c0_8 = arith.constant 0 : index
    %c0_9 = arith.constant 0 : index
    %14 = vector.load %arg5[%c0_8, %c0_9] : memref<8x32xf32, #tpu.memory_space<vmem>>, vector<8x32xf32>
    tpu.vector_store %arg5[%c0_8, %c0_9], %13 {strides = array<i32>} : memref<8x32xf32, #tpu.memory_space<vmem>>, vector<8x32xf32>,
    %c0_i32_10 = arith.constant 0 : i32
    %15 = arith.cmpi eq, %arg0, %c0_i32_10 : i32
    %16 = arith.extui %15 : i1 to i32
    %c0_i32_11 = arith.constant 0 : i32
    %17 = arith.cmpi ne, %16, %c0_i32_11 : i32
    scf.if %17 {
      %c0_12 = arith.constant 0 : index
      %c0_13 = arith.constant 0 : index
      %18 = vector.load %arg5[%c0_12, %c0_13] : memref<8x32xf32, #tpu.memory_space<vmem>>, vector<8x32xf32>
      %19 = vector.shape_cast %18 : vector<8x32xf32> to vector<1x8x32xf32>
      %cst_14 = arith.constant dense<0.000000e+00> : vector<1xf32>
      %20 = vector.multi_reduction <add>, %19, %cst_14 [1, 2] : vector<1x8x32xf32> to vector<1xf32>
      %21 = vector.shape_cast %20 : vector<1xf32> to vector<1x1x1xf32>
      %22 = vector.extract %21[0, 0, 0] : f32 from vector<1x1x1xf32>
      %cst_15 = arith.constant 0.000000e+00 : f32
      %23 = vector.broadcast %cst_15 : f32 to vector<8x128xf32>
      %24 = vector.broadcast %22 : f32 to vector<8x128xf32>
      %25 = arith.addf %23, %24 : vector<8x128xf32>
      %c0_16 = arith.constant 0 : index
      %c0_17 = arith.constant 0 : index
      %26 = vector.load %arg4[%c0_16, %c0_17] : memref<8x128xf32, #tpu.memory_space<vmem>>, vector<8x128xf32>
      tpu.vector_store %arg4[%c0_16, %c0_17], %25 {strides = array<i32>} : memref<8x128xf32, #tpu.memory_space<vmem>>, vector<8x128xf32>,
    } else {
    }
    return
  }
  func.func @transform_0(%arg0: i32) -> (i32, i32) {
    %c0_i32 = arith.constant 0 : i32
    %c0_i32_0 = arith.constant 0 : i32
    return %arg0, %c0_i32 : i32, i32
  }
  func.func @transform_1(%arg0: i32) -> (i32, i32) {
    %c0_i32 = arith.constant 0 : i32
    %c0_i32_0 = arith.constant 0 : i32
    return %arg0, %c0_i32 : i32, i32
  }
  func.func @transform_2(%arg0: i32) -> (i32, i32) {
    %c0_i32 = arith.constant 0 : i32
    %c0_i32_0 = arith.constant 0 : i32
    return %arg0, %c0_i32 : i32, i32
  }
  func.func @transform_3(%arg0: i32) -> (i32, i32) {
    %c0_i32 = arith.constant 0 : i32
    %c0_i32_0 = arith.constant 0 : i32
    %c0_i32_1 = arith.constant 0 : i32
    return %c0_i32, %c0_i32_0 : i32, i32
  }
}

</mosaic_0001>

<bundles_post_ra>
// kernel: tpu_custom_call.1
= control target key start
LH: loop header
LB: loop body
LE: loop exit
PB: predicated region body
PF: predicated region fallthrough
CT: control target
= control target key end

     0   :  { %8 = vsyncpa [#allocation4], 0  ;;  %s210_s0 = inlined_call_operand.vmem [shape: f32[16,32], index: 0, kind: input, shape index: {}]   ;;  %s211_s1 = inlined_call_operand.hbm [shape: f32[16,32], index: 1, kind: input, shape index: {}]   ;;  %s212_s2 = inlined_call_operand.vmem [shape: f32[16,1], index: 2, kind: input, shape index: {}]   ;;  %s213_s3 = inlined_call_operand.hbm [shape: f32[8,128], index: 3, kind: output, shape index: {}]  }
   0x1   :  { %9 = vsyncpa [#allocation5], 0  ;;  %s16_s14 = sshll.u32 %s211_s1, 4  ;;  %s161_s15 = smov [#allocation3]   ;;  %s17_s14 = int_to_ptr.hbm [resolvable:$true] %s16_s14 }
   0x2   :  { %s18_s16 = sshll.u32 %s161_s15, 4  ;;  %s162_s17 = smov 128   ;;  %s19_s16 = int_to_ptr.vmem [resolvable:$true] %s18_s16 }
   0x3   :  { %s163_s18 = smov 8  }
   0x4   :  { %24 = dma.hbm_to_vmem [thread:$0]  %s17_s14, 256, %s19_s16, [#allocation4], %s162_s17, %s162_s17, %s163_s18  }
   0x5   :  { %157 = dma.done.wait [#allocation4], 256  }
   0x6   :  { %158 = vsyncadd [#allocation4], 4294967040  ;;  %vm35_vm0 = vcmask 261120   ;;  %v164_v0 = vmov 0   ;;  %v165_v1 = vmov 0.0   ;;  %v45_v2 = vld [vmem:[%s212_s2] sm:$0xff] }
   0x7   :  { %108 = vset.pattern.permute.xlu0 %v164_v0  ;;  %36 = vst.msk [vmem:[#allocation2] sm:$0xff] %vm35_vm0, %v165_v1  ;;  %v46_v3 = vld [vmem:[%s212_s2 + $0x8] sm:$0xff]  ;;  %v37_v4 = vld [vmem:[%s210_s0] sm:$0xff]  ;;  %v40_v7 = vld [vmem:[#allocation3 + $0x8] sm:$0xff]  ;;  %s90_s28 = sshll.u32 %s213_s3, 4  ;;  %s91_s28 = int_to_ptr.hbm [resolvable:$true] %s90_s28 }
   0x8   :  { %49 = vperm.xlu0 %108, %v45_v2   ;;  %v39_v5 = vld [vmem:[#allocation3] sm:$0xff] }
   0x9   :  { %v38_v6 = vld [vmem:[%s210_s0 + $0x8] sm:$0xff]  ;;  %v41_v8 = vsub.f32 %v37_v4, %v39_v5  ;;  %s166_s0 = smov [#allocation6]  }
   0xa   :  { %v42_v10 = vsub.f32 %v38_v6, %v40_v7  ;;  %s88_s2 = sshll.u32 %s166_s0, 4  ;;  %s89_s2 = int_to_ptr.vmem [resolvable:$true] %s88_s2 }
   0xb   :  { %v43_v11 = vmul.f32 %v41_v8, %v41_v8 }
   0xc   :  { %v44_v12 = vmul.f32 %v42_v10, %v42_v10 }
   0xe   :  { %v59_v17 = vld [vmem:[#allocation2] sm:$0xff] }
  0x10   :  { %54 = vperm.xlu0 %108, %v46_v3  }
  0x7a   :  { %v50_v9 = vpop.permute.xlu0 %49 }
  0x7b   :  { %v57_v13 = vmul.f32 %v50_v9, %v43_v11 }
  0x7d   :  { %v61_v16 = vsel %vm35_vm0, %v57_v13, 0.0 }
  0x82   :  { %v55_v14 = vpop.permute.xlu0 %54 }
  0x83   :  { %v58_v15 = vmul.f32 %v55_v14, %v44_v12 }
  0x85   :  { %v62_v18 = vsel %vm35_vm0, %v58_v15, 0.0 }
  0x86   :  { %v63_v19 = vadd.f32 %v62_v18, %v61_v16 }
  0x88   :  { %v64_v20 = vadd.f32 %v63_v19, %v59_v17 }
  0x8a   :  { %65 = vst.msk [vmem:[#allocation2] sm:$0xff] %vm35_vm0, %v64_v20 }
  0x91   :  { %v69_v21 = vld [vmem:[#allocation2] sm:$0xff] }
  0x92   :  { %v70_v22 = vsel %vm35_vm0, %v69_v21, 0.0 }
  0x93   :  { %71 = vadd.xlane.f32.xlu1 %v70_v22 }
 0x106   :  { %v72_v23 = vpop.xlane.xlu1 %71 }
 0x107   :  { %v73_v24 = vrot.slane %v72_v23, 4 }
 0x109   :  { %v74_v25 = vadd.f32 %v73_v24, %v72_v23 }
 0x10b   :  { %v75_v26 = vrot.slane %v74_v25, 2 }
 0x10d   :  { %v76_v27 = vadd.f32 %v75_v26, %v74_v25 }
 0x10f   :  { %v77_v28 = vrot.slane %v76_v27, 1 }
 0x111   :  { %v78_v29 = vadd.f32 %v77_v28, %v76_v27 }
 0x113   :  { %100 = vpush %v78_v29 }
 0x144   :  { %s101_s29 = spop %100 }
 0x145   :  { %v80_v30 = vstv %s101_s29 }
 0x146   :  { %82 = vst [vmem:[#allocation6] sm:$0xff] %v80_v30 }
 0x147   :  { %93 = dma.vmem_to_hbm [thread:$0]  %s89_s2, 128, %s91_s28, [#allocation5]  }
 0x148   :  { %159 = dma.done.wait [#allocation5], 128  }
 0x149   :  { %160 = vsyncadd [#allocation5], 4294967168 }
 0x14a   :  { %98 = vsyncpa [#allocation4], 1 }
 0x14b   :  { %99 = vsyncpa [#allocation5], 1 }

</bundles_post_ra>
